<compile_context>
chip_gen: v7x
topology: tpu7x:2x2x1
jax: 0.10.0
libtpu: 0.0.40
codegen_flags: <defaults>
</compile_context>

<pallas_src>
import functools

import jax
import jax.numpy as jnp
from jax.experimental import pallas as pl
from jax.experimental.pallas import tpu as pltpu


# --------------------------------------------------------------------------
# Kernel
# --------------------------------------------------------------------------

def _layernorm_kernel(*refs, eps, has_residual):
    if has_residual:
        x_ref, r_ref, g_ref, b_ref, o_ref = refs
        x = x_ref[...] + r_ref[...]           # fused residual add (saves an HBM pass)
    else:
        x_ref, g_ref, b_ref, o_ref = refs
        x = x_ref[...]

    d = x.shape[-1]
    mean = jnp.mean(x, axis=-1, keepdims=True)
    diff = x - mean
    # torch.std semantics: unbiased variance (ddof = 1).
    var = jnp.sum(diff * diff, axis=-1, keepdims=True) * (1.0 / (d - 1))
    std = jnp.sqrt(var)
    # Reciprocal on the EUP slot instead of a VALU divide on the critical path.
    inv = pl.reciprocal(std + eps, approx=True)
    o_ref[...] = g_ref[...] * (diff * inv) + b_ref[...]


# --------------------------------------------------------------------------
# Wrapper
# --------------------------------------------------------------------------

def pallas_layernorm(x, gamma, beta, residual=None, *, eps=1e-12, tile_n=256):
    """LayerNorm over the last axis of x (any leading shape).

    If `residual` is given, computes LayerNorm(x + residual) fused in one kernel.
    """
    orig_shape = x.shape
    d = orig_shape[-1]
    x2 = x.reshape(-1, d).astype(jnp.float32)
    n = x2.shape[0]

    # Row tile: multiple of 8 (sublane), capped at tile_n; feature dim stays full
    # (satisfies the (8, 128) block constraint for any D). Pad N up if needed —
    # padded rows produce finite garbage (beta) and are sliced away below.
    tile = min(tile_n, max(8, pl.cdiv(n, 8) * 8))
    n_pad = pl.cdiv(n, tile) * tile
    if n_pad != n:
        x2 = jnp.pad(x2, ((0, n_pad - n), (0, 0)))

    inputs = [x2]
    in_specs = [pl.BlockSpec((tile, d), lambda i: (i, 0))]
    if residual is not None:
        r2 = residual.reshape(-1, d).astype(jnp.float32)
        if n_pad != n:
            r2 = jnp.pad(r2, ((0, n_pad - n), (0, 0)))
        inputs.append(r2)
        in_specs.append(pl.BlockSpec((tile, d), lambda i: (i, 0)))
    inputs += [gamma.reshape(1, d).astype(jnp.float32),
               beta.reshape(1, d).astype(jnp.float32)]
    in_specs += [pl.BlockSpec((1, d), lambda i: (0, 0)),
                 pl.BlockSpec((1, d), lambda i: (0, 0))]

    out = pl.pallas_call(
        functools.partial(_layernorm_kernel, eps=eps,
                          has_residual=residual is not None),
        out_shape=jax.ShapeDtypeStruct((n_pad, d), jnp.float32),
        grid=(n_pad // tile,),
        in_specs=in_specs,
        out_specs=pl.BlockSpec((tile, d), lambda i: (i, 0)),
        compiler_params=pltpu.CompilerParams(
            dimension_semantics=("parallel",)),   # megacore sharding on v7x
    )(*inputs)

    if n_pad != n:
        out = out[:n]
    return out.reshape(orig_shape)


# --------------------------------------------------------------------------
# Main
# --------------------------------------------------------------------------

if __name__ == "__main__":
    # Small shapes consistent with the module: [batch, seq, hidden], hidden on
    # the 128-lane axis (lane-dense output blocks).  N = B*S = 512 rows ->
    # grid of 2 tiles of 256 rows (exercises pipelining + parallel grid).
    B, S, H = 4, 128, 128

    key = jax.random.PRNGKey(0)
    kx, kr, kg, kb = jax.random.split(key, 4)
    x = jax.random.normal(kx, (B, S, H), jnp.float32)
    res = jax.random.normal(kr, (B, S, H), jnp.float32)
    gamma = 1.0 + 0.1 * jax.random.normal(kg, (H,), jnp.float32)
    beta = 0.1 * jax.random.normal(kb, (H,), jnp.float32)

    # Pure-JAX reference with exact torch semantics.
    def ref_ln(v):
        mean = jnp.mean(v, axis=-1, keepdims=True)
        std = jnp.std(v, axis=-1, keepdims=True, ddof=1)
        return gamma * ((v - mean) / (std + 1e-12)) + beta

    ln = jax.jit(pallas_layernorm)
    out = jax.block_until_ready(ln(x, gamma, beta))
    assert out.shape == x.shape, out.shape
    assert bool(jnp.all(jnp.isfinite(out)))
    assert bool(jnp.allclose(out, ref_ln(x), rtol=1e-2, atol=1e-2)), \
        float(jnp.max(jnp.abs(out - ref_ln(x))))

    # Fused-residual path: LayerNorm(x + res) in a single kernel pass.
    ln_res = jax.jit(lambda a, r: pallas_layernorm(a, gamma, beta, residual=r))
    out2 = jax.block_until_ready(ln_res(x, res))
    assert bool(jnp.allclose(out2, ref_ln(x + res), rtol=1e-2, atol=1e-2))

    print("KERNEL_OK")
</pallas_src>

<mosaic_0001>
module attributes {stable_mosaic.version = 11 : i64} {
  func.func @_layernorm_kernel(%arg0: i32, %arg1: memref<256x128xf32, #tpu.memory_space<vmem>>, %arg2: memref<1x128xf32, #tpu.memory_space<vmem>>, %arg3: memref<1x128xf32, #tpu.memory_space<vmem>>, %arg4: memref<256x128xf32, #tpu.memory_space<vmem>>) attributes {dimension_semantics = [#tpu.dimension_semantics<parallel>], iteration_bounds = array<i64: 2>, scalar_prefetch = 0 : i64, scratch_operands = 0 : i64, tpu.core_type = #tpu.core_type<tc>, window_params = [{transform_indices = @transform_0, window_bounds = array<i64: 256, 128>}, {pipeline_mode = #tpu.pipeline_mode<synchronous>, transform_indices = @transform_1, window_bounds = array<i64: 1, 128>}, {pipeline_mode = #tpu.pipeline_mode<synchronous>, transform_indices = @transform_2, window_bounds = array<i64: 1, 128>}, {transform_indices = @transform_3, window_bounds = array<i64: 256, 128>}]} {
    %c0 = arith.constant 0 : index
    %c0_0 = arith.constant 0 : index
    %0 = vector.load %arg1[%c0, %c0_0] : memref<256x128xf32, #tpu.memory_space<vmem>>, vector<256x128xf32>
    %cst = arith.constant dense<0.000000e+00> : vector<256xf32>
    %1 = vector.multi_reduction <add>, %0, %cst [1] : vector<256x128xf32> to vector<256xf32>
    %2 = vector.shape_cast %1 : vector<256xf32> to vector<256x1xf32>
    %cst_1 = arith.constant 1.280000e+02 : f32
    %3 = vector.broadcast %cst_1 : f32 to vector<256x1xf32>
    %4 = arith.divf %2, %3 : vector<256x1xf32>
    %5 = vector.broadcast %4 : vector<256x1xf32> to vector<256x128xf32>
    %6 = arith.subf %0, %5 : vector<256x128xf32>
    %7 = arith.mulf %6, %6 : vector<256x128xf32>
    %cst_2 = arith.constant dense<0.000000e+00> : vector<256xf32>
    %8 = vector.multi_reduction <add>, %7, %cst_2 [1] : vector<256x128xf32> to vector<256xf32>
    %9 = vector.shape_cast %8 : vector<256xf32> to vector<256x1xf32>
    %cst_3 = arith.constant 0.00787401571 : f32
    %10 = vector.broadcast %cst_3 : f32 to vector<256x1xf32>
    %11 = arith.mulf %9, %10 : vector<256x1xf32>
    %12 = math.sqrt %11 : vector<256x1xf32>
    %cst_4 = arith.constant 9.99999996E-13 : f32
    %13 = vector.broadcast %cst_4 : f32 to vector<256x1xf32>
    %14 = arith.addf %12, %13 : vector<256x1xf32>
    %15 = tpu.reciprocal %14 {approx = true} : vector<256x1xf32> -> vector<256x1xf32>
    %c0_5 = arith.constant 0 : index
    %c0_6 = arith.constant 0 : index
    %16 = vector.load %arg2[%c0_5, %c0_6] : memref<1x128xf32, #tpu.memory_space<vmem>>, vector<1x128xf32>
    %17 = vector.broadcast %15 : vector<256x1xf32> to vector<256x128xf32>
    %18 = arith.mulf %6, %17 : vector<256x128xf32>
    %19 = vector.broadcast %16 : vector<1x128xf32> to vector<256x128xf32>
    %20 = arith.mulf %19, %18 : vector<256x128xf32>
    %c0_7 = arith.constant 0 : index
    %c0_8 = arith.constant 0 : index
    %21 = vector.load %arg3[%c0_7, %c0_8] : memref<1x128xf32, #tpu.memory_space<vmem>>, vector<1x128xf32>
    %22 = vector.broadcast %21 : vector<1x128xf32> to vector<256x128xf32>
    %23 = arith.addf %20, %22 : vector<256x128xf32>
    %c0_9 = arith.constant 0 : index
    %c0_10 = arith.constant 0 : index
    %24 = vector.load %arg4[%c0_9, %c0_10] : memref<256x128xf32, #tpu.memory_space<vmem>>, vector<256x128xf32>
    tpu.vector_store %arg4[%c0_9, %c0_10], %23 {strides = array<i32>} : memref<256x128xf32, #tpu.memory_space<vmem>>, vector<256x128xf32>,
    return
  }
  func.func @transform_0(%arg0: i32) -> (i32, i32) {
    %c0_i32 = arith.constant 0 : i32
    %c0_i32_0 = arith.constant 0 : i32
    return %arg0, %c0_i32 : i32, i32
  }
  func.func @transform_1(%arg0: i32) -> (i32, i32) {
    %c0_i32 = arith.constant 0 : i32
    %c0_i32_0 = arith.constant 0 : i32
    %c0_i32_1 = arith.constant 0 : i32
    return %c0_i32, %c0_i32_0 : i32, i32
  }
  func.func @transform_2(%arg0: i32) -> (i32, i32) {
    %c0_i32 = arith.constant 0 : i32
    %c0_i32_0 = arith.constant 0 : i32
    %c0_i32_1 = arith.constant 0 : i32
    return %c0_i32, %c0_i32_0 : i32, i32
  }
  func.func @transform_3(%arg0: i32) -> (i32, i32) {
    %c0_i32 = arith.constant 0 : i32
    %c0_i32_0 = arith.constant 0 : i32
    return %arg0, %c0_i32 : i32, i32
  }
}

</mosaic_0001>

<bundles_post_ra>
// kernel: pallas_layernorm.1
= control target key start
LH: loop header
LB: loop body
LE: loop exit
PB: predicated region body
PF: predicated region fallthrough
CT: control target
= control target key end

     0   :  { %8 = vsyncpa [#allocation3], 0  ;;  %s2246_s0 = inlined_call_operand.hbm [shape: f32[512,128], index: 0, kind: input, shape index: {}]   ;;  %s2247_s1 = inlined_call_operand.vmem [shape: f32[1,128], index: 1, kind: input, shape index: {}]   ;;  %s2248_s2 = inlined_call_operand.vmem [shape: f32[1,128], index: 2, kind: input, shape index: {}]   ;;  %s2249_s3 = inlined_call_operand.hbm [shape: f32[512,128], index: 3, kind: output, shape index: {}]  }
   0x1   :  { %10 = vsyncpa [#allocation3 + $0x1], 0 }
   0x2   :  { %11 = vsyncpa [#allocation4], 0 }
   0x3   :  { %13 = vsyncpa [#allocation4 + $0x1], 0  ;;  %s1317_s12 = smov 0   ;;  %s1319_s13 = smov 0  }
   0x4   :  { %s1321_s14 = smov 0   ;;  %s1323_s15 = smov 0  }
   0x5 LB: > { %s1338_s16 = sadd.s32 4294967295, %s1289_s15   ;;  %s997_s17 = sadd.s32 4294967294, %s1289_s15   ;;  %s1289_s15 = sphi %s1323_s15, %s2262_s15   ;;  %s1285_s14 = sphi %s1321_s14, %s2261_s14   ;;  %s1281_s13 = sphi %s1319_s13, %s2260_s13   ;;  %s1277_s12 = sphi %s1317_s12, %s2259_s12  }
   0x6   : > { %s1342_s18 = sadd.s32 1, %s1289_s15   ;;  %s26_s19 = sadd.s32 1, %s1285_s14 }
   0x7   : > { %s23_s20 = ssub.s32 %s1289_s15, %s1342_s18  ;;  %p33_p0 = scmp.ne.s32.totalorder %s1285_s14, %s1281_s13 }
   0x8   : > { %p24_p1 = scmp.eq.s32.totalorder %s23_s20, 0  ;;  %p34_p2 = scmp.eq.s32.totalorder %s1289_s15, 0 }
   0x9   : > { %p39_p3 = scmp.ne.s32.totalorder %s1281_s13, %s1277_s12  ;;  %p40_p4 = scmp.eq.s32.totalorder %s1338_s16, 0 }
   0xa   : > { %s1354_s21 = scalar_select %p24_p1, %s1285_s14, %s26_s19  }
   0xb   : > { %p1356_p5 = por %p34_p2, %p33_p0  ;;  %p1360_p6 = por %p40_p4, %p39_p3 }
   0xc   : > { %p105_p7 = scmp.eq.s32.totalorder %s1338_s16, 1  ;;  %p111_p8 = scmp.eq.s32.totalorder %s997_s17, 1 }
   0xd   : > { %p1027_p10 = scmp.lt.s32.totalorder %s1289_s15, 2  ;;  %s137_s26 = sand.u32 1, %s1285_s14  }
   0xe   : > { %p1367_p11 = por %p105_p7, %p33_p0  ;;  %p1371_p12 = por %p111_p8, %p39_p3 }
   0xf   : > { %s1013_s27 = sshll.u32 %s1289_s15, 12  ;;  %s1000_s28 = sshll.u32 %s137_s26, 8 }
  0x10   : > { %s2253_s24 = scalar_select %p1367_p11, 1, 0 }
  0x11   : > { %s2254_s25 = scalar_select %p1371_p12, 1, 0 }
  0x12   : > { %s1380_s4 = scalar_lea.hbm %s2246_s0, %s1013_s27  ;;  %s141_s5 = scalar_lea.vmem [#allocation2], %s1000_s28 }
  0x13   : > { %s148_s6 = sshll.u32 %s141_s5, 4  ;;  %p1384_p13 = pnand %p1027_p10, %p1356_p5  ;;  %s1388_s6 = int_to_ptr.vmem [resolvable:$true] %s148_s6 }
  0x14   : > { %s1390_s8 = scalar_lea.sflag [#allocation3], %s137_s26  ;;  %s1193_s9 = scalar_lea.hbm %s1380_s4, 4096 }
  0x15   : > { %p1194_p0 = scmp.ne.s32.totalorder %s1380_s4, %s1193_s9  ;;  %p1195_p1 = pneg %p1384_p13 }
  0x16   : > { %s1198_s17 = scalar_lea.hbm %s2246_s0, 8192  ;;  %p1199_p4 = scmp.lt.u32.totalorder %s1380_s4, %s2246_s0 }
  0x17   : > { %p1196_p2 = pnand %p1195_p1, %p1194_p0  ;;  %p1200_p5 = scmp.lt.u32.totalorder %s1198_s17, %s1193_s9 }
  0x18   : > { %p1202_p8 = scmp.lt.u32.totalorder %s1193_s9, %s1380_s4 }
  0x19   : > { %p1197_p3 = pneg %p1196_p2  ;;  %p1201_p7 = por %p1200_p5, %p1199_p4 }
  0x1b   : > { %p1203_p10 = por %p1202_p8, %p1201_p7 }
  0x1d   : > { %p1204_p9 = pnand %p1203_p10, %p1197_p3 }
  0x1f   : > { %1207 = shalt.err (!%p1204_p9)
}
  0x20   : > { %s1208_s22 = scalar_lea.vmem %s1388_s6, 4096  ;;  %s1291_s26 = smov [#allocation2]  }
  0x21   : > { %p1209_p0 = scmp.ne.s32.totalorder %s1388_s6, %s1208_s22  ;;  %s1213_s27 = sshll.u32 %s1291_s26, 4  ;;  %s1214_s27 = int_to_ptr.vmem [resolvable:$false] %s1213_s27 }
  0x22   : > { %s1215_s28 = scalar_lea.vmem %s1214_s27, 8192  ;;  %p1216_p11 = scmp.lt.s32.totalorder %s1388_s6, %s1214_s27 }
  0x23   : > { %p1211_p2 = pnand %p1209_p0, %p1195_p1  ;;  %p1217_p4 = scmp.lt.s32.totalorder %s1215_s28, %s1208_s22 }
  0x25   : > { %p1212_p12 = pneg %p1211_p2  ;;  %p1218_p5 = por %p1217_p4, %p1216_p11 }
  0x27   : > { %p1219_p7 = pnand %p1218_p5, %p1212_p12 }
  0x29   : > { %1222 = shalt.err (!%p1219_p7)
}
  0x2a   : > { %s1292_s29 = smov 128   ;;  %s1293_s30 = smov 8  }
  0x2b   : > { %1022 = dma.hbm_to_vmem [thread:$0]  (!%p1384_p13), %s1380_s4, 4096, %s1388_s6, %s1390_s8, %s1292_s29, %s1292_s29, %s1293_s30  }
  0x2c   : > { %p1003_p9 = scmp.ge.s32.totalorder %s1289_s15, 1  ;;  %p156_p1 = scmp.lt.s32.totalorder %s1289_s15, 3 }
  0x2e   : > { %p157_p3 = pnand %p1003_p9, %p156_p1 }
  0x2f   : > { %s1421_s5 = sand.u32 (!%p157_p3), 1, %s1281_s13  }
  0x30   : > { %160 = sbr.rel (%p157_p3) target bundleno = 491 (0x1eb), region = 32  ;;  %s1004_s9 = sshll.u32 (!%p157_p3), %s1421_s5, 8 }
  0x31   : > { %s163_s10 = scalar_lea.sflag (!%p157_p3), [#allocation3], %s1421_s5  ;;  %s1427_s11 = scalar_lea.vmem (!%p157_p3), [#allocation2], %s1004_s9 }
  0x37   : > { %1268 = dma.done.wait (%p1360_p6), %s163_s10, 4096  }
  0x38   : > { %1270 = vsyncadd (%p1360_p6), %s163_s10, 4294963200  ;;  %v1434_v0 = vld [vmem:[%s1427_s11] sm:$0xff]  ;;  %v1437_v1 = vld [vmem:[%s1427_s11 + $0x10] sm:$0xff]  ;;  %s1830_s8 = scalar_lea.vmem [#allocation5], %s1004_s9  ;;  %s1014_s17 = sshll.u32 %s1338_s16, 12 }
  0x39   : > { %223 = vadd.xlane.f32.xlu0 %v1434_v0  ;;  %227 = vadd.xlane.f32.xlu1 %v1437_v1  ;;  %v1442_v2 = vld [vmem:[%s1427_s11 + $0x8] sm:$0xff]  ;;  %v1445_v3 = vld [vmem:[%s1427_s11 + $0x18] sm:$0xff]  ;;  %v1450_v4 = vld [vmem:[%s1427_s11 + $0x20] sm:$0xff]  ;;  %s924_s19 = sshll.u32 %s1830_s8, 4  ;;  %s2197_s26 = scalar_lea.hbm %s2249_s3, %s1014_s17  ;;  %s2199_s19 = int_to_ptr.vmem [resolvable:$true] %s924_s19 }
  0x3a   : > { %v1453_v5 = vld [vmem:[%s1427_s11 + $0x28] sm:$0xff]  ;;  %v1458_v6 = vld [vmem:[%s1427_s11 + $0x30] sm:$0xff]  ;;  %v1461_v7 = vld [vmem:[%s1427_s11 + $0x38] sm:$0xff]  ;;  %s911_s16 = scalar_lea.sflag [#allocation4], %s1421_s5  ;;  %s1223_s27 = scalar_lea.vmem %s2199_s19, 4096 }
  0x3b   : > { %v1466_v8 = vld [vmem:[%s1427_s11 + $0x40] sm:$0xff]  ;;  %v1469_v9 = vld [vmem:[%s1427_s11 + $0x48] sm:$0xff]  ;;  %v1474_v10 = vld [vmem:[%s1427_s11 + $0x50] sm:$0xff]  ;;  %p1224_p6 = scmp.ne.s32.totalorder %s2199_s19, %s1223_s27  ;;  %p2256_p11 = scmp.ne.s32.totalorder %s2253_s24, 0 }
  0x3c   : > { %v1477_v11 = vld [vmem:[%s1427_s11 + $0x58] sm:$0xff]  ;;  %v1482_v12 = vld [vmem:[%s1427_s11 + $0x60] sm:$0xff]  ;;  %v1485_v13 = vld [vmem:[%s1427_s11 + $0x68] sm:$0xff]  ;;  %s1294_s28 = smov [#allocation5]  }
  0x3d   : > { %225 = vadd.xlane.f32.xlu0 %v1442_v2  ;;  %229 = vadd.xlane.f32.xlu1 %v1445_v3  ;;  %v1490_v14 = vld [vmem:[%s1427_s11 + $0x70] sm:$0xff]  ;;  %v1493_v15 = vld [vmem:[%s1427_s11 + $0x78] sm:$0xff]  ;;  %v1498_v16 = vld [vmem:[%s1427_s11 + $0x80] sm:$0xff]  ;;  %p1225_p12 = pnand %p1224_p6, %p2256_p11  ;;  %s1227_s29 = sshll.u32 %s1294_s28, 4  ;;  %s1228_s29 = int_to_ptr.vmem [resolvable:$false] %s1227_s29 }
  0x3e   : > { %v1501_v17 = vld [vmem:[%s1427_s11 + $0x88] sm:$0xff]  ;;  %v1506_v18 = vld [vmem:[%s1427_s11 + $0x90] sm:$0xff]  ;;  %v1509_v19 = vld [vmem:[%s1427_s11 + $0x98] sm:$0xff]  ;;  %s1229_s30 = scalar_lea.vmem %s1228_s29, 8192  ;;  %p1230_p8 = scmp.lt.s32.totalorder %s2199_s19, %s1228_s29 }
  0x3f   : > { %v1514_v20 = vld [vmem:[%s1427_s11 + $0xa0] sm:$0xff]  ;;  %v1517_v21 = vld [vmem:[%s1427_s11 + $0xa8] sm:$0xff]  ;;  %v1522_v22 = vld [vmem:[%s1427_s11 + $0xb0] sm:$0xff]  ;;  %p1226_p13 = pneg %p1225_p12  ;;  %p1231_p10 = scmp.lt.s32.totalorder %s1229_s30, %s1223_s27 }
  0x40   : > { %v1525_v23 = vld [vmem:[%s1427_s11 + $0xb8] sm:$0xff]  ;;  %v1530_v24 = vld [vmem:[%s1427_s11 + $0xc0] sm:$0xff]  ;;  %v1533_v25 = vld [vmem:[%s1427_s11 + $0xc8] sm:$0xff] }
  0x41   : > { %231 = vadd.xlane.f32.xlu0 %v1450_v4  ;;  %233 = vadd.xlane.f32.xlu1 %v1453_v5  ;;  %v1538_v26 = vld [vmem:[%s1427_s11 + $0xd0] sm:$0xff]  ;;  %v1541_v27 = vld [vmem:[%s1427_s11 + $0xd8] sm:$0xff]  ;;  %v1546_v28 = vld [vmem:[%s1427_s11 + $0xe0] sm:$0xff]  ;;  %p1232_p0 = por %p1231_p10, %p1230_p8 }
  0x42   : > { %v1549_v29 = vld [vmem:[%s1427_s11 + $0xe8] sm:$0xff]  ;;  %v1554_v30 = vld [vmem:[%s1427_s11 + $0xf0] sm:$0xff]  ;;  %v1557_v31 = vld [vmem:[%s1427_s11 + $0xf8] sm:$0xff] }
  0x43   : > { %p1233_p2 = pnand %p1232_p0, %p1226_p13 }
  0x45   : > { %235 = vadd.xlane.f32.xlu0 %v1458_v6  ;;  %237 = vadd.xlane.f32.xlu1 %v1461_v7 }
  0x49   : > { %239 = vadd.xlane.f32.xlu0 %v1466_v8  ;;  %241 = vadd.xlane.f32.xlu1 %v1469_v9 }
  0x4d   : > { %243 = vadd.xlane.f32.xlu0 %v1474_v10  ;;  %245 = vadd.xlane.f32.xlu1 %v1477_v11 }
  0x51   : > { %247 = vadd.xlane.f32.xlu0 %v1482_v12  ;;  %249 = vadd.xlane.f32.xlu1 %v1485_v13 }
  0x55   : > { %251 = vadd.xlane.f32.xlu0 %v1490_v14  ;;  %253 = vadd.xlane.f32.xlu1 %v1493_v15 }
  0x59   : > { %255 = vadd.xlane.f32.xlu0 %v1498_v16  ;;  %257 = vadd.xlane.f32.xlu1 %v1501_v17 }
  0x5d   : > { %259 = vadd.xlane.f32.xlu0 %v1506_v18  ;;  %261 = vadd.xlane.f32.xlu1 %v1509_v19 }
  0x61   : > { %263 = vadd.xlane.f32.xlu0 %v1514_v20  ;;  %265 = vadd.xlane.f32.xlu1 %v1517_v21 }
  0x65   : > { %267 = vadd.xlane.f32.xlu0 %v1522_v22  ;;  %269 = vadd.xlane.f32.xlu1 %v1525_v23 }
  0x69   : > { %271 = vadd.xlane.f32.xlu0 %v1530_v24  ;;  %273 = vadd.xlane.f32.xlu1 %v1533_v25 }
  0x6d   : > { %275 = vadd.xlane.f32.xlu0 %v1538_v26  ;;  %277 = vadd.xlane.f32.xlu1 %v1541_v27 }
  0x71   : > { %279 = vadd.xlane.f32.xlu0 %v1546_v28  ;;  %281 = vadd.xlane.f32.xlu1 %v1549_v29 }
  0x75   : > { %283 = vadd.xlane.f32.xlu0 %v1554_v30  ;;  %285 = vadd.xlane.f32.xlu1 %v1557_v31 }
  0xc6   : > { %v224_v32 = vpop.xlane.xlu0 %223  ;;  %v228_v33 = vpop.xlane.xlu1 %227 }
  0xc7   : > { %v288_v34 = vmul.f32 0.0078125, %v224_v32  ;;  %v290_v35 = vmul.f32 0.0078125, %v228_v33 }
  0xc9   : > { %v1562_v36 = vsub.f32 %v1434_v0, %v288_v34  ;;  %v1565_v37 = vsub.f32 %v1437_v1, %v290_v35 }
  0xca   : > { %v226_v38 = vpop.xlane.xlu0 %225  ;;  %v230_v39 = vpop.xlane.xlu1 %229 }
  0xcb   : > { %v289_v40 = vmul.f32 0.0078125, %v226_v38  ;;  %v352_v41 = vmul.f32 %v1562_v36, %v1562_v36  ;;  %v291_v42 = vmul.f32 0.0078125, %v230_v39  ;;  %v354_v45 = vmul.f32 %v1565_v37, %v1565_v37 }
  0xcd   : > { %v1570_v43 = vsub.f32 %v1442_v2, %v289_v40  ;;  %384 = vadd.xlane.f32.xlu0 %v352_v41  ;;  %v1573_v44 = vsub.f32 %v1445_v3, %v291_v42 }
  0xce   : > { %v232_v46 = vpop.xlane.xlu0 %231  ;;  %v234_v47 = vpop.xlane.xlu1 %233 }
  0xcf   : > { %v292_v48 = vmul.f32 0.0078125, %v232_v46  ;;  %v353_v49 = vmul.f32 %v1570_v43, %v1570_v43  ;;  %v293_v50 = vmul.f32 0.0078125, %v234_v47  ;;  %v355_v53 = vmul.f32 %v1573_v44, %v1573_v44 }
  0xd1   : > { %v1580_v51 = vsub.f32 %v1450_v4, %v292_v48  ;;  %388 = vadd.xlane.f32.xlu0 %v354_v45  ;;  %386 = vadd.xlane.f32.xlu1 %v353_v49  ;;  %v1583_v52 = vsub.f32 %v1453_v5, %v293_v50 }
  0xd2   : > { %v236_v54 = vpop.xlane.xlu0 %235  ;;  %v238_v55 = vpop.xlane.xlu1 %237 }
  0xd3   : > { %v294_v56 = vmul.f32 0.0078125, %v236_v54  ;;  %v356_v57 = vmul.f32 %v1580_v51, %v1580_v51  ;;  %v295_v58 = vmul.f32 0.0078125, %v238_v55  ;;  %v357_v61 = vmul.f32 %v1583_v52, %v1583_v52 }
  0xd5   : > { %v1590_v59 = vsub.f32 %v1458_v6, %v294_v56  ;;  %390 = vadd.xlane.f32.xlu1 %v355_v53  ;;  %392 = vadd.xlane.f32.xlu0 %v356_v57  ;;  %v1593_v60 = vsub.f32 %v1461_v7, %v295_v58 }
  0xd6   : > { %v240_v62 = vpop.xlane.xlu0 %239  ;;  %v242_v63 = vpop.xlane.xlu1 %241 }
  0xd7   : > { %v296_v0 = vmul.f32 0.0078125, %v240_v62  ;;  %v358_v1 = vmul.f32 %v1590_v59, %v1590_v59  ;;  %v297_v2 = vmul.f32 0.0078125, %v242_v63  ;;  %v359_v5 = vmul.f32 %v1593_v60, %v1593_v60 }
  0xd9   : > { %v1600_v3 = vsub.f32 %v1466_v8, %v296_v0  ;;  %394 = vadd.xlane.f32.xlu1 %v357_v61  ;;  %396 = vadd.xlane.f32.xlu0 %v358_v1  ;;  %v1603_v4 = vsub.f32 %v1469_v9, %v297_v2 }
  0xda   : > { %v244_v6 = vpop.xlane.xlu0 %243  ;;  %v246_v7 = vpop.xlane.xlu1 %245 }
  0xdb   : > { %v298_v32 = vmul.f32 0.0078125, %v244_v6  ;;  %v360_v33 = vmul.f32 %v1600_v3, %v1600_v3  ;;  %v299_v34 = vmul.f32 0.0078125, %v246_v7  ;;  %v361_v9 = vmul.f32 %v1603_v4, %v1603_v4 }
  0xdd   : > { %v1610_v35 = vsub.f32 %v1474_v10, %v298_v32  ;;  %398 = vadd.xlane.f32.xlu1 %v359_v5  ;;  %400 = vadd.xlane.f32.xlu0 %v360_v33  ;;  %v1613_v8 = vsub.f32 %v1477_v11, %v299_v34 }
  0xde   : > { %v248_v38 = vpop.xlane.xlu0 %247  ;;  %v250_v39 = vpop.xlane.xlu1 %249 }
  0xdf   : > { %v300_v40 = vmul.f32 0.0078125, %v248_v38  ;;  %v362_v41 = vmul.f32 %v1610_v35, %v1610_v35  ;;  %v301_v42 = vmul.f32 0.0078125, %v250_v39  ;;  %v363_v11 = vmul.f32 %v1613_v8, %v1613_v8 }
  0xe1   : > { %v1620_v45 = vsub.f32 %v1482_v12, %v300_v40  ;;  %402 = vadd.xlane.f32.xlu1 %v361_v9  ;;  %404 = vadd.xlane.f32.xlu0 %v362_v41  ;;  %v1623_v10 = vsub.f32 %v1485_v13, %v301_v42 }
  0xe2   : > { %v252_v46 = vpop.xlane.xlu0 %251  ;;  %v254_v47 = vpop.xlane.xlu1 %253 }
  0xe3   : > { %v302_v48 = vmul.f32 0.0078125, %v252_v46  ;;  %v364_v49 = vmul.f32 %v1620_v45, %v1620_v45  ;;  %v303_v50 = vmul.f32 0.0078125, %v254_v47  ;;  %v365_v13 = vmul.f32 %v1623_v10, %v1623_v10 }
  0xe5   : > { %v1630_v53 = vsub.f32 %v1490_v14, %v302_v48  ;;  %406 = vadd.xlane.f32.xlu1 %v363_v11  ;;  %408 = vadd.xlane.f32.xlu0 %v364_v49  ;;  %v1633_v12 = vsub.f32 %v1493_v15, %v303_v50 }
  0xe6   : > { %v256_v54 = vpop.xlane.xlu0 %255  ;;  %v258_v55 = vpop.xlane.xlu1 %257 }
  0xe7   : > { %v304_v56 = vmul.f32 0.0078125, %v256_v54  ;;  %v366_v57 = vmul.f32 %v1630_v53, %v1630_v53  ;;  %v305_v58 = vmul.f32 0.0078125, %v258_v55  ;;  %v367_v15 = vmul.f32 %v1633_v12, %v1633_v12 }
  0xe9   : > { %v1640_v61 = vsub.f32 %v1498_v16, %v304_v56  ;;  %410 = vadd.xlane.f32.xlu1 %v365_v13  ;;  %412 = vadd.xlane.f32.xlu0 %v366_v57  ;;  %v1643_v14 = vsub.f32 %v1501_v17, %v305_v58 }
  0xea   : > { %v260_v62 = vpop.xlane.xlu0 %259  ;;  %v262_v63 = vpop.xlane.xlu1 %261 }
  0xeb   : > { %v306_v0 = vmul.f32 0.0078125, %v260_v62  ;;  %v368_v1 = vmul.f32 %v1640_v61, %v1640_v61  ;;  %v307_v2 = vmul.f32 0.0078125, %v262_v63  ;;  %v369_v17 = vmul.f32 %v1643_v14, %v1643_v14 }
  0xed   : > { %v1650_v5 = vsub.f32 %v1506_v18, %v306_v0  ;;  %414 = vadd.xlane.f32.xlu1 %v367_v15  ;;  %416 = vadd.xlane.f32.xlu0 %v368_v1  ;;  %v1653_v16 = vsub.f32 %v1509_v19, %v307_v2 }
  0xee   : > { %v264_v6 = vpop.xlane.xlu0 %263  ;;  %v266_v7 = vpop.xlane.xlu1 %265 }
  0xef   : > { %v308_v32 = vmul.f32 0.0078125, %v264_v6  ;;  %v370_v33 = vmul.f32 %v1650_v5, %v1650_v5  ;;  %v309_v34 = vmul.f32 0.0078125, %v266_v7  ;;  %v371_v19 = vmul.f32 %v1653_v16, %v1653_v16 }
  0xf1   : > { %v1660_v9 = vsub.f32 %v1514_v20, %v308_v32  ;;  %418 = vadd.xlane.f32.xlu1 %v369_v17  ;;  %420 = vadd.xlane.f32.xlu0 %v370_v33  ;;  %v1663_v18 = vsub.f32 %v1517_v21, %v309_v34 }
  0xf2   : > { %v268_v38 = vpop.xlane.xlu0 %267  ;;  %v270_v39 = vpop.xlane.xlu1 %269 }
  0xf3   : > { %v310_v40 = vmul.f32 0.0078125, %v268_v38  ;;  %v372_v41 = vmul.f32 %v1660_v9, %v1660_v9  ;;  %v311_v42 = vmul.f32 0.0078125, %v270_v39  ;;  %v373_v21 = vmul.f32 %v1663_v18, %v1663_v18 }
  0xf5   : > { %v1670_v11 = vsub.f32 %v1522_v22, %v310_v40  ;;  %422 = vadd.xlane.f32.xlu1 %v371_v19  ;;  %424 = vadd.xlane.f32.xlu0 %v372_v41  ;;  %v1673_v20 = vsub.f32 %v1525_v23, %v311_v42 }
  0xf6   : > { %v272_v46 = vpop.xlane.xlu0 %271  ;;  %v274_v47 = vpop.xlane.xlu1 %273 }
  0xf7   : > { %v312_v48 = vmul.f32 0.0078125, %v272_v46  ;;  %v374_v49 = vmul.f32 %v1670_v11, %v1670_v11  ;;  %v313_v50 = vmul.f32 0.0078125, %v274_v47  ;;  %v375_v23 = vmul.f32 %v1673_v20, %v1673_v20 }
  0xf9   : > { %v1680_v13 = vsub.f32 %v1530_v24, %v312_v48  ;;  %426 = vadd.xlane.f32.xlu1 %v373_v21  ;;  %428 = vadd.xlane.f32.xlu0 %v374_v49  ;;  %v1683_v22 = vsub.f32 %v1533_v25, %v313_v50 }
  0xfa   : > { %v276_v54 = vpop.xlane.xlu0 %275  ;;  %v278_v55 = vpop.xlane.xlu1 %277 }
  0xfb   : > { %v314_v56 = vmul.f32 0.0078125, %v276_v54  ;;  %v376_v57 = vmul.f32 %v1680_v13, %v1680_v13  ;;  %v315_v58 = vmul.f32 0.0078125, %v278_v55  ;;  %v377_v25 = vmul.f32 %v1683_v22, %v1683_v22 }
  0xfd   : > { %v1690_v15 = vsub.f32 %v1538_v26, %v314_v56  ;;  %430 = vadd.xlane.f32.xlu1 %v375_v23  ;;  %432 = vadd.xlane.f32.xlu0 %v376_v57  ;;  %v1693_v24 = vsub.f32 %v1541_v27, %v315_v58 }
  0xfe   : > { %v280_v62 = vpop.xlane.xlu0 %279  ;;  %v282_v63 = vpop.xlane.xlu1 %281 }
  0xff   : > { %v316_v0 = vmul.f32 0.0078125, %v280_v62  ;;  %v378_v1 = vmul.f32 %v1690_v15, %v1690_v15  ;;  %v317_v2 = vmul.f32 0.0078125, %v282_v63  ;;  %v379_v27 = vmul.f32 %v1693_v24, %v1693_v24 }
 0x101   : > { %v1700_v17 = vsub.f32 %v1546_v28, %v316_v0  ;;  %434 = vadd.xlane.f32.xlu1 %v377_v25  ;;  %436 = vadd.xlane.f32.xlu0 %v378_v1  ;;  %v1703_v26 = vsub.f32 %v1549_v29, %v317_v2 }
 0x102   : > { %v284_v6 = vpop.xlane.xlu0 %283  ;;  %v286_v7 = vpop.xlane.xlu1 %285 }
 0x103   : > { %v318_v32 = vmul.f32 0.0078125, %v284_v6  ;;  %v380_v33 = vmul.f32 %v1700_v17, %v1700_v17  ;;  %v319_v34 = vmul.f32 0.0078125, %v286_v7  ;;  %v381_v29 = vmul.f32 %v1703_v26, %v1703_v26 }
 0x105   : > { %v1710_v19 = vsub.f32 %v1554_v30, %v318_v32  ;;  %438 = vadd.xlane.f32.xlu1 %v379_v27  ;;  %440 = vadd.xlane.f32.xlu0 %v380_v33  ;;  %v1713_v28 = vsub.f32 %v1557_v31, %v319_v34 }
 0x107   : > { %v382_v38 = vmul.f32 %v1710_v19, %v1710_v19  ;;  %v383_v39 = vmul.f32 %v1713_v28, %v1713_v28 }
 0x109   : > { %442 = vadd.xlane.f32.xlu1 %v381_v29  ;;  %444 = vadd.xlane.f32.xlu0 %v382_v38 }
 0x10d   : > { %446 = vadd.xlane.f32.xlu1 %v383_v39 }
 0x15a   : > { %v385_v40 = vpop.xlane.xlu0 %384 }
 0x15b   : > { %v448_v30 = vmul.f32 0.007874016, %v385_v40 }
 0x15d   : > { %1065 = vrsqrt.f32 %v448_v30  ;;  %vm482_vm0 = vcmp.eq.f32.partialorder %v448_v30, inf  ;;  %vm484_vm1 = vcmp.eq.f32.partialorder %v448_v30, 0.0  ;;  %v485_v58 = vand.u32 2147483648, %v448_v30 }
 0x15e   : > { %v387_v41 = vpop.xlane.xlu1 %386  ;;  %v389_v42 = vpop.xlane.xlu0 %388 }
 0x15f   : > { %v449_v21 = vmul.f32 0.007874016, %v387_v41  ;;  %v450_v31 = vmul.f32 0.007874016, %v389_v42 }
 0x161   : > { %1067 = vrsqrt.f32 %v449_v21  ;;  %vm489_vm2 = vcmp.eq.f32.partialorder %v449_v21, inf  ;;  %vm491_vm3 = vcmp.eq.f32.partialorder %v449_v21, 0.0  ;;  %v492_v25 = vand.u32 2147483648, %v449_v21 }
 0x162   : > { %1069 = vrsqrt.f32 %v450_v31  ;;  %v391_v46 = vpop.xlane.xlu1 %390  ;;  %v393_v47 = vpop.xlane.xlu0 %392  ;;  %vm496_vm4 = vcmp.eq.f32.partialorder %v450_v31, inf  ;;  %vm498_vm5 = vcmp.eq.f32.partialorder %v450_v31, 0.0  ;;  %v499_v63 = vand.u32 2147483648, %v450_v31 }
 0x163   : > { %v1721_v48 = vmul.f32 0.007874016, %v391_v46  ;;  %v1723_v49 = vmul.f32 0.007874016, %v393_v47 }
 0x165   : > { %1071 = vrsqrt.f32 %v1721_v48  ;;  %vm503_vm6 = vcmp.eq.f32.partialorder %v1721_v48, inf  ;;  %vm505_vm7 = vcmp.eq.f32.partialorder %v1721_v48, 0.0  ;;  %v506_v29 = vand.u32 2147483648, %v1721_v48 }
 0x166   : > { %1073 = vrsqrt.f32 %v1723_v49  ;;  %v395_v50 = vpop.xlane.xlu1 %394  ;;  %v397_v23 = vpop.xlane.xlu0 %396  ;;  %vm510_vm8 = vcmp.eq.f32.partialorder %v1723_v49, inf  ;;  %vm512_vm9 = vcmp.eq.f32.partialorder %v1723_v49, 0.0  ;;  %v513_v40 = vand.u32 2147483648, %v1723_v49 }
 0x167   : > { %v1066_v54 = vpop.eup %1065  ;;  %v1727_v55 = vmul.f32 0.007874016, %v395_v50  ;;  %v1729_v56 = vmul.f32 0.007874016, %v397_v23 }
 0x168   : > { %v481_v57 = vmul.f32 %v1066_v54, %v448_v30 }
 0x169   : > { %1075 = vrsqrt.f32 %v1727_v55  ;;  %vm517_vm10 = vcmp.eq.f32.partialorder %v1727_v55, inf  ;;  %vm519_vm11 = vcmp.eq.f32.partialorder %v1727_v55, 0.0  ;;  %vm524_vm12 = vcmp.eq.f32.partialorder %v1729_v56, inf }
 0x16a   : > { %v483_v62 = vsel %vm482_vm0, %v448_v30, %v481_v57  ;;  %1077 = vrsqrt.f32 %v1729_v56  ;;  %v399_v0 = vpop.xlane.xlu1 %398  ;;  %v401_v1 = vpop.xlane.xlu0 %400  ;;  %v520_v57 = vand.u32 2147483648, %v1727_v55  ;;  %vm526_vm13 = vcmp.eq.f32.partialorder %v1729_v56, 0.0 }
 0x16b   : > { %v1068_v2 = vpop.eup %1067  ;;  %v486_v27 = vsel %vm484_vm1, %v485_v58, %v483_v62  ;;  %v1734_v6 = vmul.f32 0.007874016, %v399_v0  ;;  %v1736_v7 = vmul.f32 0.007874016, %v401_v1 }
 0x16c   : > { %v1070_v32 = vpop.eup %1069  ;;  %v704_v33 = vadd.f32 1e-12, %v486_v27  ;;  %v488_v34 = vmul.f32 %v1068_v2, %v449_v21 }
 0x16d   : > { %v495_v38 = vmul.f32 %v1070_v32, %v450_v31  ;;  %1079 = vrsqrt.f32 %v1734_v6  ;;  %vm531_vm14 = vcmp.eq.f32.partialorder %v1734_v6, inf  ;;  %vm533_vm15 = vcmp.eq.f32.partialorder %v1734_v6, 0.0 }
 0x16e   : > { %1081 = vrcp.f32 %v704_v33  ;;  %v490_v39 = vsel %vm489_vm2, %v449_v21, %v488_v34  ;;  %v403_v30 = vpop.xlane.xlu1 %402  ;;  %v405_v58 = vpop.xlane.xlu0 %404  ;;  %vm538_vm0 = vcmp.eq.f32.partialorder %v1736_v7, inf  ;;  %vm540_vm1 = vcmp.eq.f32.partialorder %v1736_v7, 0.0 }
 0x16f   : > { %v1072_v41 = vpop.eup %1071  ;;  %v493_v42 = vsel %vm491_vm3, %v492_v25, %v490_v39  ;;  %v497_v46 = vsel %vm496_vm4, %v450_v31, %v495_v38  ;;  %1083 = vrsqrt.f32 %v1736_v7  ;;  %v1755_v21 = vmul.f32 0.007874016, %v403_v30 }
 0x170   : > { %v1074_v47 = vpop.eup %1073  ;;  %v705_v50 = vadd.f32 1e-12, %v493_v42  ;;  %v500_v23 = vsel %vm498_vm5, %v499_v63, %v497_v46  ;;  %v502_v54 = vmul.f32 %v1072_v41, %v1721_v48  ;;  %v527_v31 = vand.u32 2147483648, %v1729_v56 }
 0x171   : > { %v706_v62 = vadd.f32 1e-12, %v500_v23  ;;  %v509_v0 = vmul.f32 %v1074_v47, %v1723_v49  ;;  %v1767_v27 = vmul.f32 0.007874016, %v405_v58  ;;  %v1790_v47 = vld [vmem:[%s2247_s1] ss:$0 sm:$0xff] }
 0x172   : > { %1085 = vrcp.f32 %v705_v50  ;;  %v504_v25 = vsel %vm503_vm6, %v1721_v48, %v502_v54  ;;  %v407_v39 = vpop.xlane.xlu1 %406  ;;  %vm545_vm2 = vcmp.eq.f32.partialorder %v1755_v21, inf  ;;  %vm547_vm3 = vcmp.eq.f32.partialorder %v1755_v21, 0.0 }
 0x173   : > { %v1076_v63 = vpop.eup %1075  ;;  %1087 = vrcp.f32 %v706_v62  ;;  %v507_v1 = vsel %vm505_vm7, %v506_v29, %v504_v25  ;;  %v511_v2 = vsel %vm510_vm8, %v1723_v49, %v509_v0  ;;  %v534_v49 = vand.u32 2147483648, %v1734_v6 }
 0x174   : > { %v1078_v32 = vpop.eup %1077  ;;  %v707_v33 = vadd.f32 1e-12, %v507_v1  ;;  %v514_v34 = vsel %vm512_vm9, %v513_v40, %v511_v2  ;;  %v516_v38 = vmul.f32 %v1076_v63, %v1727_v55  ;;  %1089 = vrsqrt.f32 %v1755_v21  ;;  %v1803_v63 = vld [vmem:[%s2248_s2] ss:$0 sm:$0xff] }
 0x175   : > { %v708_v30 = vadd.f32 1e-12, %v514_v34  ;;  %v523_v48 = vmul.f32 %v1078_v32, %v1729_v56  ;;  %v541_v0 = vand.u32 2147483648, %v1736_v7  ;;  %v1798_v25 = vmul.f32 0.007874016, %v407_v39 }
 0x176   : > { %1091 = vrcp.f32 %v707_v33  ;;  %v518_v29 = vsel %vm517_vm10, %v1727_v55, %v516_v38  ;;  %v409_v55 = vpop.xlane.xlu0 %408  ;;  %vm552_vm4 = vcmp.eq.f32.partialorder %v1767_v27, inf  ;;  %vm554_vm5 = vcmp.eq.f32.partialorder %v1767_v27, 0.0 }
 0x177   : > { %v1080_v40 = vpop.eup %1079  ;;  %1093 = vrcp.f32 %v708_v30  ;;  %v521_v41 = vsel %vm519_vm11, %v520_v57, %v518_v29  ;;  %v525_v42 = vsel %vm524_vm12, %v1729_v56, %v523_v48  ;;  %v1813_v32 = vmul.f32 0.007874016, %v409_v55 }
 0x178   : > { %v1082_v46 = vpop.eup %1081  ;;  %v709_v50 = vadd.f32 1e-12, %v521_v41  ;;  %v528_v23 = vsel %vm526_vm13, %v527_v31, %v525_v42  ;;  %v530_v54 = vmul.f32 %v1080_v40, %v1734_v6  ;;  %1095 = vrsqrt.f32 %v1767_v27 }
 0x179   : > { %v1084_v57 = vpop.eup %1083  ;;  %v769_v58 = vmul.f32 %v1082_v46, %v1562_v36  ;;  %v710_v62 = vadd.f32 1e-12, %v528_v23  ;;  %v411_v36 = vpop.xlane.xlu1 %410  ;;  %v548_v42 = vand.u32 2147483648, %v1755_v21  ;;  %v555_v23 = vand.u32 2147483648, %v1767_v27 }
 0x17a   : > { %1097 = vrcp.f32 %v709_v50  ;;  %v532_v56 = vsel %vm531_vm14, %v1734_v6, %v530_v54  ;;  %v537_v31 = vmul.f32 %v1084_v57, %v1736_v7  ;;  %v1824_v29 = vmul.f32 0.007874016, %v411_v36 }
 0x17b   : > { %v807_v1 = vmul.f32 %v1790_v47, %v769_v58  ;;  %1099 = vrcp.f32 %v710_v62  ;;  %v535_v2 = vsel %vm533_vm15, %v534_v49, %v532_v56  ;;  %vm559_vm6 = vcmp.eq.f32.partialorder %v1798_v25, inf }
 0x17c   : > { %v1086_v33 = vpop.eup %1085  ;;  %v711_v34 = vadd.f32 1e-12, %v535_v2  ;;  %v539_v38 = vsel %vm538_vm0, %v1736_v7, %v537_v31  ;;  %1101 = vrsqrt.f32 %v1798_v25  ;;  %v413_v7 = vpop.xlane.xlu0 %412  ;;  %vm561_vm7 = vcmp.eq.f32.partialorder %v1798_v25, 0.0 }
 0x17d   : > { %v1088_v39 = vpop.eup %1087  ;;  %v846_v30 = vadd.f32 %v1803_v63, %v807_v1  ;;  %v770_v48 = vmul.f32 %v1086_v33, %v1570_v43  ;;  %v542_v6 = vsel %vm540_vm1, %v541_v0, %v539_v38  ;;  %v415_v62 = vpop.xlane.xlu1 %414  ;;  %v1858_v38 = vmul.f32 0.007874016, %v413_v7 }
 0x17e   : > { %v1090_v49 = vpop.eup %1089  ;;  %v771_v40 = vmul.f32 %v1088_v39, %v1565_v37  ;;  %1103 = vrcp.f32 %v711_v34  ;;  %v712_v41 = vadd.f32 1e-12, %v542_v6  ;;  %vm566_vm8 = vcmp.eq.f32.partialorder %v1813_v32, inf }
 0x17f   : > { %878 = vst [vmem:[%s1830_s8] sm:$0xff] %v846_v30  ;;  %v808_v46 = vmul.f32 %v1790_v47, %v770_v48  ;;  %v544_v43 = vmul.f32 %v1090_v49, %v1755_v21  ;;  %1105 = vrsqrt.f32 %v1813_v32  ;;  %vm568_vm9 = vcmp.eq.f32.partialorder %v1813_v32, 0.0 }
 0x180   : > { %v1092_v50 = vpop.eup %1091  ;;  %v809_v37 = vmul.f32 %v1790_v47, %v771_v40  ;;  %1107 = vrcp.f32 %v712_v41  ;;  %v417_v49 = vpop.xlane.xlu0 %416  ;;  %vm573_vm10 = vcmp.eq.f32.partialorder %v1824_v29, inf  ;;  %vm575_vm11 = vcmp.eq.f32.partialorder %v1824_v29, 0.0 }
 0x181   : > { %v1094_v54 = vpop.eup %1093  ;;  %v847_v55 = vadd.f32 %v1803_v63, %v808_v46  ;;  %v772_v57 = vmul.f32 %v1092_v50, %v1573_v44  ;;  %v546_v58 = vsel %vm545_vm2, %v1755_v21, %v544_v43  ;;  %1109 = vrsqrt.f32 %v1824_v29 }
 0x182   : > { %v1096_v0 = vpop.eup %1095  ;;  %v848_v56 = vadd.f32 %v1803_v63, %v809_v37  ;;  %v773_v31 = vmul.f32 %v1094_v54, %v1580_v51  ;;  %v549_v36 = vsel %vm547_vm3, %v548_v42, %v546_v58  ;;  %v562_v51 = vand.u32 2147483648, %v1798_v25 }
 0x183   : > { %879 = vst [vmem:[%s1830_s8 + $0x8] sm:$0xff] %v847_v55  ;;  %v810_v44 = vmul.f32 %v1790_v47, %v772_v57  ;;  %v713_v1 = vadd.f32 1e-12, %v549_v36  ;;  %v551_v2 = vmul.f32 %v1096_v0, %v1767_v27  ;;  %v1860_v21 = vmul.f32 0.007874016, %v415_v62 }
 0x184   : > { %v1098_v33 = vpop.eup %1097  ;;  %880 = vst [vmem:[%s1830_s8 + $0x10] sm:$0xff] %v848_v56  ;;  %v811_v34 = vmul.f32 %v1790_v47, %v773_v31  ;;  %v569_v31 = vand.u32 2147483648, %v1813_v32  ;;  %vm580_vm12 = vcmp.eq.f32.partialorder %v1858_v38, inf  ;;  %vm582_vm13 = vcmp.eq.f32.partialorder %v1858_v38, 0.0 }
 0x185   : > { %v1100_v39 = vpop.eup %1099  ;;  %v849_v30 = vadd.f32 %v1803_v63, %v810_v44  ;;  %v774_v48 = vmul.f32 %v1098_v33, %v1583_v52  ;;  %1111 = vrcp.f32 %v713_v1  ;;  %v553_v6 = vsel %vm552_vm4, %v1767_v27, %v551_v2  ;;  %v419_v27 = vpop.xlane.xlu1 %418 }
 0x186   : > { %v1102_v40 = vpop.eup %1101  ;;  %v850_v41 = vadd.f32 %v1803_v63, %v811_v34  ;;  %v775_v42 = vmul.f32 %v1100_v39, %v1590_v59  ;;  %v556_v46 = vsel %vm554_vm5, %v555_v23, %v553_v6  ;;  %1113 = vrsqrt.f32 %v1858_v38  ;;  %v421_v2 = vpop.xlane.xlu0 %420 }
 0x187   : > { %881 = vst [vmem:[%s1830_s8 + $0x18] sm:$0xff] %v849_v30  ;;  %v812_v43 = vmul.f32 %v1790_v47, %v774_v48  ;;  %v714_v52 = vadd.f32 1e-12, %v556_v46  ;;  %v558_v7 = vmul.f32 %v1102_v40, %v1798_v25  ;;  %1115 = vrsqrt.f32 %v1860_v21 }
 0x188   : > { %v1104_v50 = vpop.eup %1103  ;;  %882 = vst [vmem:[%s1830_s8 + $0x20] sm:$0xff] %v850_v41  ;;  %v813_v37 = vmul.f32 %v1790_v47, %v775_v42  ;;  %v1880_v59 = vmul.f32 0.007874016, %v417_v49  ;;  %v576_v34 = vand.u32 2147483648, %v1824_v29  ;;  %v1913_v42 = vmul.f32 0.007874016, %v419_v27 }
 0x189   : > { %v1106_v23 = vpop.eup %1105  ;;  %v851_v54 = vadd.f32 %v1803_v63, %v812_v43  ;;  %v776_v55 = vmul.f32 %v1104_v50, %v1593_v60  ;;  %1117 = vrcp.f32 %v714_v52  ;;  %v560_v57 = vsel %vm559_vm6, %v1798_v25, %v558_v7  ;;  %v423_v6 = vpop.xlane.xlu1 %422 }
 0x18a   : > { %v1108_v58 = vpop.eup %1107  ;;  %v852_v62 = vadd.f32 %v1803_v63, %v813_v37  ;;  %v563_v0 = vsel %vm561_vm7, %v562_v51, %v560_v57  ;;  %v565_v56 = vmul.f32 %v1106_v23, %v1813_v32  ;;  %1119 = vrsqrt.f32 %v1880_v59  ;;  %v425_v50 = vpop.xlane.xlu0 %424 }
 0x18b   : > { %v1110_v36 = vpop.eup %1109  ;;  %883 = vst [vmem:[%s1830_s8 + $0x28] sm:$0xff] %v851_v54  ;;  %v814_v44 = vmul.f32 %v1790_v47, %v776_v55  ;;  %v777_v60 = vmul.f32 %v1108_v58, %v1600_v3  ;;  %v715_v1 = vadd.f32 1e-12, %v563_v0  ;;  %v1916_v52 = vmul.f32 0.007874016, %v421_v2 }
 0x18c   : > { %884 = vst [vmem:[%s1830_s8 + $0x30] sm:$0xff] %v852_v62  ;;  %v567_v25 = vsel %vm566_vm8, %v1813_v32, %v565_v56  ;;  %v572_v33 = vmul.f32 %v1110_v36, %v1824_v29  ;;  %v583_v7 = vand.u32 2147483648, %v1858_v38  ;;  %vm587_vm14 = vcmp.eq.f32.partialorder %v1860_v21, inf }
 0x18d   : > { %v853_v51 = vadd.f32 %v1803_v63, %v814_v44  ;;  %v815_v3 = vmul.f32 %v1790_v47, %v777_v60  ;;  %1121 = vrcp.f32 %v715_v1  ;;  %v570_v39 = vsel %vm568_vm9, %v569_v31, %v567_v25  ;;  %v427_v0 = vpop.xlane.xlu1 %426 }
 0x18e   : > { %v716_v30 = vadd.f32 1e-12, %v570_v39  ;;  %v574_v48 = vsel %vm573_vm10, %v1824_v29, %v572_v33  ;;  %vm589_vm15 = vcmp.eq.f32.partialorder %v1860_v21, 0.0  ;;  %vm594_vm0 = vcmp.eq.f32.partialorder %v1880_v59, inf }
 0x18f   : > { %v1112_v49 = vpop.eup %1111  ;;  %885 = vst [vmem:[%s1830_s8 + $0x38] sm:$0xff] %v853_v51  ;;  %v854_v40 = vadd.f32 %v1803_v63, %v815_v3  ;;  %v577_v41 = vsel %vm575_vm11, %v576_v34, %v574_v48  ;;  %vm596_vm1 = vcmp.eq.f32.partialorder %v1880_v59, 0.0  ;;  %v597_v36 = vand.u32 2147483648, %v1880_v59  ;;  %v429_v51 = vpop.xlane.xlu0 %428 }
 0x190   : > { %v1114_v32 = vpop.eup %1113  ;;  %v778_v46 = vmul.f32 %v1112_v49, %v1603_v4  ;;  %1123 = vrcp.f32 %v716_v30  ;;  %v717_v43 = vadd.f32 1e-12, %v577_v41  ;;  %v590_v4 = vand.u32 2147483648, %v1860_v21 }
 0x191   : > { %886 = vst [vmem:[%s1830_s8 + $0x40] sm:$0xff] %v854_v40  ;;  %v579_v29 = vmul.f32 %v1114_v32, %v1858_v38  ;;  %1125 = vrsqrt.f32 %v1913_v42  ;;  %v1116_v37 = vpop.eup %1115  ;;  %v1941_v44 = vmul.f32 0.007874016, %v423_v6  ;;  %vm601_vm2 = vcmp.eq.f32.partialorder %v1913_v42, inf  ;;  %v431_v40 = vpop.xlane.xlu1 %430 }
 0x192   : > { %v816_v27 = vmul.f32 %v1790_v47, %v778_v46  ;;  %1127 = vrcp.f32 %v717_v43  ;;  %v586_v55 = vmul.f32 %v1116_v37, %v1860_v21  ;;  %v1951_v34 = vmul.f32 0.007874016, %v427_v0 }
 0x193   : > { %v1118_v23 = vpop.eup %1117  ;;  %v581_v54 = vsel %vm580_vm12, %v1858_v38, %v579_v29  ;;  %1129 = vrsqrt.f32 %v1916_v52  ;;  %v1948_v38 = vmul.f32 0.007874016, %v425_v50  ;;  %vm603_vm3 = vcmp.eq.f32.partialorder %v1913_v42, 0.0 }
 0x194   : > { %v855_v57 = vadd.f32 %v1803_v63, %v816_v27  ;;  %v779_v58 = vmul.f32 %v1118_v23, %v1610_v35  ;;  %v584_v62 = vsel %vm582_vm13, %v583_v7, %v581_v54  ;;  %v588_v31 = vsel %vm587_vm14, %v1860_v21, %v586_v55  ;;  %v1120_v60 = vpop.eup %1119  ;;  %v433_v54 = vpop.xlane.xlu0 %432 }
 0x195   : > { %v718_v56 = vadd.f32 1e-12, %v584_v62  ;;  %v591_v35 = vsel %vm589_vm15, %v590_v4, %v588_v31  ;;  %v593_v33 = vmul.f32 %v1120_v60, %v1880_v59  ;;  %v604_v30 = vand.u32 2147483648, %v1913_v42 }
 0x196   : > { %887 = vst [vmem:[%s1830_s8 + $0x48] sm:$0xff] %v855_v57  ;;  %v817_v1 = vmul.f32 %v1790_v47, %v779_v58  ;;  %v719_v25 = vadd.f32 1e-12, %v591_v35  ;;  %vm608_vm4 = vcmp.eq.f32.partialorder %v1916_v52, inf  ;;  %v1967_v49 = vmul.f32 0.007874016, %v429_v51 }
 0x197   : > { %v1122_v2 = vpop.eup %1121  ;;  %1131 = vrcp.f32 %v718_v56  ;;  %v595_v21 = vsel %vm594_vm0, %v1880_v59, %v593_v33  ;;  %vm610_vm5 = vcmp.eq.f32.partialorder %v1916_v52, 0.0  ;;  %v611_v7 = vand.u32 2147483648, %v1916_v52  ;;  %v435_v56 = vpop.xlane.xlu1 %434 }
 0x198   : > { %v856_v3 = vadd.f32 %v1803_v63, %v817_v1  ;;  %v780_v39 = vmul.f32 %v1122_v2, %v1613_v8  ;;  %1133 = vrsqrt.f32 %v1941_v44  ;;  %v598_v8 = vsel %vm596_vm1, %v597_v36, %v595_v21 }
 0x199   : > { %1135 = vrcp.f32 %v719_v25  ;;  %v720_v46 = vadd.f32 1e-12, %v598_v8  ;;  %vm615_vm6 = vcmp.eq.f32.partialorder %v1941_v44, inf  ;;  %vm617_vm7 = vcmp.eq.f32.partialorder %v1941_v44, 0.0 }
 0x19a   : > { %v1124_v48 = vpop.eup %1123  ;;  %888 = vst [vmem:[%s1830_s8 + $0x50] sm:$0xff] %v856_v3  ;;  %v818_v6 = vmul.f32 %v1790_v47, %v780_v39  ;;  %1137 = vrsqrt.f32 %v1948_v38  ;;  %v618_v23 = vand.u32 2147483648, %v1941_v44  ;;  %vm622_vm8 = vcmp.eq.f32.partialorder %v1948_v38, inf }
 0x19b   : > { %v1126_v41 = vpop.eup %1125  ;;  %v781_v32 = vmul.f32 %v1124_v48, %v1620_v45  ;;  %1139 = vrsqrt.f32 %v1951_v34  ;;  %vm624_vm9 = vcmp.eq.f32.partialorder %v1948_v38, 0.0  ;;  %v1995_v0 = vmul.f32 0.007874016, %v431_v40 }
 0x19c   : > { %v1128_v43 = vpop.eup %1127  ;;  %v857_v29 = vadd.f32 %v1803_v63, %v818_v6  ;;  %v600_v59 = vmul.f32 %v1126_v41, %v1913_v42  ;;  %1141 = vrcp.f32 %v720_v46  ;;  %v625_v60 = vand.u32 2147483648, %v1948_v38 }
 0x19d   : > { %v1130_v50 = vpop.eup %1129  ;;  %v819_v37 = vmul.f32 %v1790_v47, %v781_v32  ;;  %v782_v27 = vmul.f32 %v1128_v43, %v1623_v10  ;;  %1143 = vrsqrt.f32 %v1967_v49  ;;  %v2002_v1 = vmul.f32 0.007874016, %v433_v54 }
 0x19e   : > { %889 = vst [vmem:[%s1830_s8 + $0x58] sm:$0xff] %v857_v29  ;;  %v602_v45 = vsel %vm601_vm2, %v1913_v42, %v600_v59  ;;  %v607_v4 = vmul.f32 %v1130_v50, %v1916_v52  ;;  %vm629_vm10 = vcmp.eq.f32.partialorder %v1951_v34, inf  ;;  %vm631_vm11 = vcmp.eq.f32.partialorder %v1951_v34, 0.0 }
 0x19f   : > { %v858_v55 = vadd.f32 %v1803_v63, %v819_v37  ;;  %v820_v10 = vmul.f32 %v1790_v47, %v782_v27  ;;  %v605_v57 = vsel %vm603_vm3, %v604_v30, %v602_v45  ;;  %vm636_vm12 = vcmp.eq.f32.partialorder %v1967_v49, inf  ;;  %v437_v37 = vpop.xlane.xlu0 %436 }
 0x1a0   : > { %v721_v58 = vadd.f32 1e-12, %v605_v57  ;;  %v609_v62 = vsel %vm608_vm4, %v1916_v52, %v607_v4  ;;  %v2010_v52 = vmul.f32 0.007874016, %v435_v56  ;;  %vm638_vm13 = vcmp.eq.f32.partialorder %v1967_v49, 0.0 }
 0x1a1   : > { %v1132_v31 = vpop.eup %1131  ;;  %890 = vst [vmem:[%s1830_s8 + $0x60] sm:$0xff] %v858_v55  ;;  %v859_v36 = vadd.f32 %v1803_v63, %v820_v10  ;;  %v612_v42 = vsel %vm610_vm5, %v611_v7, %v609_v62  ;;  %vm643_vm14 = vcmp.eq.f32.partialorder %v1995_v0, inf  ;;  %vm645_vm15 = vcmp.eq.f32.partialorder %v1995_v0, 0.0 }
 0x1a2   : > { %v1134_v35 = vpop.eup %1133  ;;  %v783_v2 = vmul.f32 %v1132_v31, %v1630_v53  ;;  %1145 = vrcp.f32 %v721_v58  ;;  %v722_v25 = vadd.f32 1e-12, %v612_v42  ;;  %v632_v53 = vand.u32 2147483648, %v1951_v34 }
 0x1a3   : > { %v1136_v33 = vpop.eup %1135  ;;  %891 = vst [vmem:[%s1830_s8 + $0x68] sm:$0xff] %v859_v36  ;;  %v614_v51 = vmul.f32 %v1134_v35, %v1941_v44  ;;  %1147 = vrsqrt.f32 %v1995_v0  ;;  %v646_v42 = vand.u32 2147483648, %v1995_v0  ;;  %vm650_vm0 = vcmp.eq.f32.partialorder %v2002_v1, inf }
 0x1a4   : > { %v1138_v3 = vpop.eup %1137  ;;  %v821_v39 = vmul.f32 %v1790_v47, %v783_v2  ;;  %v784_v21 = vmul.f32 %v1136_v33, %v1633_v12  ;;  %1149 = vrcp.f32 %v722_v25  ;;  %vm652_vm1 = vcmp.eq.f32.partialorder %v2002_v1, 0.0 }
 0x1a5   : > { %v1140_v30 = vpop.eup %1139  ;;  %v616_v48 = vsel %vm615_vm6, %v1941_v44, %v614_v51  ;;  %v621_v6 = vmul.f32 %v1138_v3, %v1948_v38  ;;  %1151 = vrsqrt.f32 %v2002_v1  ;;  %v653_v33 = vand.u32 2147483648, %v2002_v1 }
 0x1a6   : > { %v860_v8 = vadd.f32 %v1803_v63, %v821_v39  ;;  %v822_v40 = vmul.f32 %v1790_v47, %v784_v21  ;;  %v619_v12 = vsel %vm617_vm7, %v618_v23, %v616_v48  ;;  %v628_v41 = vmul.f32 %v1140_v30, %v1951_v34  ;;  %v1142_v32 = vpop.eup %1141  ;;  %v439_v23 = vpop.xlane.xlu1 %438 }
 0x1a7   : > { %v723_v46 = vadd.f32 1e-12, %v619_v12  ;;  %v623_v43 = vsel %vm622_vm8, %v1948_v38, %v621_v6  ;;  %1153 = vrsqrt.f32 %v2010_v52  ;;  %v1144_v29 = vpop.eup %1143  ;;  %v785_v44 = vmul.f32 %v1142_v32, %v1640_v61 }
 0x1a8   : > { %892 = vst [vmem:[%s1830_s8 + $0x70] sm:$0xff] %v860_v8  ;;  %v861_v59 = vadd.f32 %v1803_v63, %v822_v40  ;;  %v626_v7 = vsel %vm624_vm9, %v625_v60, %v623_v43  ;;  %v630_v50 = vsel %vm629_vm10, %v1951_v34, %v628_v41  ;;  %v635_v4 = vmul.f32 %v1144_v29, %v1967_v49 }
 0x1a9   : > { %1155 = vrcp.f32 %v723_v46  ;;  %v724_v27 = vadd.f32 1e-12, %v626_v7  ;;  %v633_v45 = vsel %vm631_vm11, %v632_v53, %v630_v50  ;;  %v823_v54 = vmul.f32 %v1790_v47, %v785_v44 }
 0x1aa   : > { %893 = vst [vmem:[%s1830_s8 + $0x78] sm:$0xff] %v861_v59  ;;  %v725_v61 = vadd.f32 1e-12, %v633_v45  ;;  %v639_v38 = vand.u32 2147483648, %v1967_v49  ;;  %v637_v55 = vsel %vm636_vm12, %v1967_v49, %v635_v4  ;;  %v2050_v34 = vmul.f32 0.007874016, %v437_v37  ;;  %v441_v49 = vpop.xlane.xlu0 %440  ;;  %v443_v51 = vpop.xlane.xlu1 %442 }
 0x1ab   : > { %1157 = vrcp.f32 %v724_v27  ;;  %v862_v57 = vadd.f32 %v1803_v63, %v823_v54  ;;  %v2055_v62 = vmul.f32 0.007874016, %v439_v23  ;;  %vm657_vm2 = vcmp.eq.f32.partialorder %v2010_v52, inf }
 0x1ac   : > { %v1146_v10 = vpop.eup %1145  ;;  %1159 = vrcp.f32 %v725_v61  ;;  %v640_v58 = vsel %vm638_vm13, %v639_v38, %v637_v55  ;;  %vm659_vm3 = vcmp.eq.f32.partialorder %v2010_v52, 0.0  ;;  %v2078_v48 = vmul.f32 0.007874016, %v441_v49 }
 0x1ad   : > { %v1148_v56 = vpop.eup %1147  ;;  %v786_v31 = vmul.f32 %v1146_v10, %v1643_v14  ;;  %v726_v36 = vadd.f32 1e-12, %v640_v58  ;;  %1161 = vrsqrt.f32 %v2050_v34  ;;  %894 = vst [vmem:[%s1830_s8 + $0x80] sm:$0xff] %v862_v57  ;;  %v2084_v12 = vmul.f32 0.007874016, %v443_v51 }
 0x1ae   : > { %v1150_v60 = vpop.eup %1149  ;;  %v642_v35 = vmul.f32 %v1148_v56, %v1995_v0  ;;  %1163 = vrsqrt.f32 %v2055_v62  ;;  %v660_v46 = vand.u32 2147483648, %v2010_v52  ;;  %vm664_vm4 = vcmp.eq.f32.partialorder %v2050_v34, inf  ;;  %v445_v27 = vpop.xlane.xlu0 %444 }
 0x1af   : > { %v1152_v2 = vpop.eup %1151  ;;  %v824_v25 = vmul.f32 %v1790_v47, %v786_v31  ;;  %v787_v14 = vmul.f32 %v1150_v60, %v1650_v5  ;;  %1165 = vrcp.f32 %v726_v36  ;;  %vm666_vm5 = vcmp.eq.f32.partialorder %v2050_v34, 0.0  ;;  %v447_v45 = vpop.xlane.xlu1 %446 }
 0x1b0   : > { %v644_v3 = vsel %vm643_vm14, %v1995_v0, %v642_v35  ;;  %v649_v39 = vmul.f32 %v1152_v2, %v2002_v1  ;;  %1167 = vrsqrt.f32 %v2078_v48  ;;  %v667_v23 = vand.u32 2147483648, %v2050_v34 }
 0x1b1   : > { %v1154_v21 = vpop.eup %1153  ;;  %v863_v53 = vadd.f32 %v1803_v63, %v824_v25  ;;  %v825_v5 = vmul.f32 %v1790_v47, %v787_v14  ;;  %v647_v30 = vsel %vm645_vm15, %v646_v42, %v644_v3  ;;  %vm671_vm6 = vcmp.eq.f32.partialorder %v2055_v62, inf }
 0x1b2   : > { %v727_v6 = vadd.f32 1e-12, %v647_v30  ;;  %v651_v8 = vsel %vm650_vm0, %v2002_v1, %v649_v39  ;;  %v656_v40 = vmul.f32 %v1154_v21, %v2010_v52  ;;  %vm673_vm7 = vcmp.eq.f32.partialorder %v2055_v62, 0.0 }
 0x1b3   : > { %v1156_v41 = vpop.eup %1155  ;;  %895 = vst [vmem:[%s1830_s8 + $0x88] sm:$0xff] %v863_v53  ;;  %v864_v32 = vadd.f32 %v1803_v63, %v825_v5  ;;  %v654_v0 = vsel %vm652_vm1, %v653_v33, %v651_v8  ;;  %v2113_v57 = vmul.f32 0.007874016, %v445_v27  ;;  %v2115_v58 = vmul.f32 0.007874016, %v447_v45 }
 0x1b4   : > { %v788_v43 = vmul.f32 %v1156_v41, %v1653_v16  ;;  %1169 = vrcp.f32 %v727_v6  ;;  %v728_v29 = vadd.f32 1e-12, %v654_v0  ;;  %v658_v59 = vsel %vm657_vm2, %v2010_v52, %v656_v40 }
 0x1b5   : > { %v1158_v44 = vpop.eup %1157  ;;  %896 = vst [vmem:[%s1830_s8 + $0x90] sm:$0xff] %v864_v32  ;;  %v661_v7 = vsel %vm659_vm3, %v660_v46, %v658_v59  ;;  %1171 = vrsqrt.f32 %v2084_v12  ;;  %v674_v42 = vand.u32 2147483648, %v2055_v62  ;;  %vm678_vm8 = vcmp.eq.f32.partialorder %v2078_v48, inf }
 0x1b6   : > { %v1160_v1 = vpop.eup %1159  ;;  %v826_v16 = vmul.f32 %v1790_v47, %v788_v43  ;;  %v789_v50 = vmul.f32 %v1158_v44, %v1660_v9  ;;  %1173 = vrcp.f32 %v728_v29  ;;  %v729_v37 = vadd.f32 1e-12, %v661_v7 }
 0x1b7   : > { %v1162_v4 = vpop.eup %1161  ;;  %v790_v52 = vmul.f32 %v1160_v1, %v1663_v18  ;;  %vm680_vm9 = vcmp.eq.f32.partialorder %v2078_v48, 0.0  ;;  %vm685_vm10 = vcmp.eq.f32.partialorder %v2084_v12, inf  ;;  %v688_v40 = vand.u32 2147483648, %v2084_v12 }
 0x1b8   : > { %v1164_v54 = vpop.eup %1163  ;;  %v865_v61 = vadd.f32 %v1803_v63, %v826_v16  ;;  %v827_v38 = vmul.f32 %v1790_v47, %v789_v50  ;;  %1175 = vrcp.f32 %v729_v37  ;;  %v663_v9 = vmul.f32 %v1162_v4, %v2050_v34 }
 0x1b9   : > { %v1166_v55 = vpop.eup %1165  ;;  %v828_v10 = vmul.f32 %v1790_v47, %v790_v52  ;;  %v670_v18 = vmul.f32 %v1164_v54, %v2055_v62  ;;  %1177 = vrsqrt.f32 %v2113_v57  ;;  %vm687_vm11 = vcmp.eq.f32.partialorder %v2084_v12, 0.0 }
 0x1ba   : > { %897 = vst [vmem:[%s1830_s8 + $0x98] sm:$0xff] %v865_v61  ;;  %v866_v56 = vadd.f32 %v1803_v63, %v827_v38  ;;  %v791_v31 = vmul.f32 %v1166_v55, %v1670_v11  ;;  %v665_v36 = vsel %vm664_vm4, %v2050_v34, %v663_v9  ;;  %v1168_v14 = vpop.eup %1167  ;;  %1179 = vrsqrt.f32 %v2115_v58 }
 0x1bb   : > { %v867_v60 = vadd.f32 %v1803_v63, %v828_v10  ;;  %v668_v35 = vsel %vm666_vm5, %v667_v23, %v665_v36  ;;  %v672_v49 = vsel %vm671_vm6, %v2055_v62, %v670_v18  ;;  %v677_v3 = vmul.f32 %v1168_v14, %v2078_v48 }
 0x1bc   : > { %898 = vst [vmem:[%s1830_s8 + $0xa0] sm:$0xff] %v866_v56  ;;  %v829_v11 = vmul.f32 %v1790_v47, %v791_v31  ;;  %v730_v2 = vadd.f32 1e-12, %v668_v35  ;;  %v675_v25 = vsel %vm673_vm7, %v674_v42, %v672_v49  ;;  %v681_v62 = vand.u32 2147483648, %v2078_v48 }
 0x1bd   : > { %899 = vst [vmem:[%s1830_s8 + $0xa8] sm:$0xff] %v867_v60  ;;  %v731_v33 = vadd.f32 1e-12, %v675_v25  ;;  %v679_v5 = vsel %vm678_vm8, %v2078_v48, %v677_v3  ;;  %vm692_vm12 = vcmp.eq.f32.partialorder %v2113_v57, inf  ;;  %vm694_vm13 = vcmp.eq.f32.partialorder %v2113_v57, 0.0 }
 0x1be   : > { %v1170_v34 = vpop.eup %1169  ;;  %v868_v51 = vadd.f32 %v1803_v63, %v829_v11  ;;  %1181 = vrcp.f32 %v730_v2  ;;  %v682_v8 = vsel %vm680_vm9, %v681_v62, %v679_v5  ;;  %vm699_vm14 = vcmp.eq.f32.partialorder %v2115_v58, inf }
 0x1bf   : > { %v1172_v39 = vpop.eup %1171  ;;  %v792_v21 = vmul.f32 %v1170_v34, %v1673_v20  ;;  %1183 = vrcp.f32 %v731_v33  ;;  %v732_v32 = vadd.f32 1e-12, %v682_v8  ;;  %v702_v23 = vand.u32 2147483648, %v2115_v58 }
 0x1c0   : > { %v1174_v53 = vpop.eup %1173  ;;  %900 = vst [vmem:[%s1830_s8 + $0xb0] sm:$0xff] %v868_v51  ;;  %v684_v30 = vmul.f32 %v1172_v39, %v2084_v12  ;;  %vm701_vm15 = vcmp.eq.f32.partialorder %v2115_v58, 0.0 }
 0x1c1   : > { %v830_v6 = vmul.f32 %v1790_v47, %v792_v21  ;;  %v793_v20 = vmul.f32 %v1174_v53, %v1680_v13  ;;  %1185 = vrcp.f32 %v732_v32 }
 0x1c2   : > { %v1176_v41 = vpop.eup %1175  ;;  %v686_v0 = vsel %vm685_vm10, %v2084_v12, %v684_v30 }
 0x1c3   : > { %v869_v48 = vadd.f32 %v1803_v63, %v830_v6  ;;  %v831_v46 = vmul.f32 %v1790_v47, %v793_v20  ;;  %v794_v43 = vmul.f32 %v1176_v41, %v1683_v22  ;;  %v689_v29 = vsel %vm687_vm11, %v688_v40, %v686_v0  ;;  %v1178_v13 = vpop.eup %1177 }
 0x1c4   : > { %v733_v59 = vadd.f32 1e-12, %v689_v29  ;;  %v691_v1 = vmul.f32 %v1178_v13, %v2113_v57  ;;  %v1180_v12 = vpop.eup %1179  ;;  %v695_v22 = vand.u32 2147483648, %v2113_v57 }
 0x1c5   : > { %901 = vst [vmem:[%s1830_s8 + $0xb8] sm:$0xff] %v869_v48  ;;  %v870_v44 = vadd.f32 %v1803_v63, %v831_v46  ;;  %v832_v7 = vmul.f32 %v1790_v47, %v794_v43  ;;  %v698_v27 = vmul.f32 %v1180_v12, %v2115_v58 }
 0x1c6   : > { %1187 = vrcp.f32 %v733_v59  ;;  %v693_v37 = vsel %vm692_vm12, %v2113_v57, %v691_v1 }
 0x1c7   : > { %902 = vst [vmem:[%s1830_s8 + $0xc0] sm:$0xff] %v870_v44  ;;  %v871_v16 = vadd.f32 %v1803_v63, %v832_v7  ;;  %v696_v52 = vsel %vm694_vm13, %v695_v22, %v693_v37  ;;  %v700_v38 = vsel %vm699_vm14, %v2115_v58, %v698_v27 }
 0x1c8   : > { %v1182_v50 = vpop.eup %1181  ;;  %v734_v61 = vadd.f32 1e-12, %v696_v52  ;;  %v703_v55 = vsel %vm701_vm15, %v702_v23, %v700_v38 }
 0x1c9   : > { %v1184_v45 = vpop.eup %1183  ;;  %903 = vst [vmem:[%s1830_s8 + $0xc8] sm:$0xff] %v871_v16  ;;  %v795_v4 = vmul.f32 %v1182_v50, %v1690_v15  ;;  %v735_v10 = vadd.f32 1e-12, %v703_v55 }
 0x1ca   : > { %v796_v54 = vmul.f32 %v1184_v45, %v1693_v24  ;;  %1189 = vrcp.f32 %v734_v61 }
 0x1cb   : > { %v833_v9 = vmul.f32 %v1790_v47, %v795_v4  ;;  %v1186_v57 = vpop.eup %1185  ;;  %1191 = vrcp.f32 %v735_v10 }
 0x1cc   : > { %v834_v15 = vmul.f32 %v1790_v47, %v796_v54  ;;  %v797_v56 = vmul.f32 %v1186_v57, %v1700_v17 }
 0x1cd   : > { %v872_v18 = vadd.f32 %v1803_v63, %v833_v9 }
 0x1ce   : > { %v873_v24 = vadd.f32 %v1803_v63, %v834_v15  ;;  %v835_v31 = vmul.f32 %v1790_v47, %v797_v56 }
 0x1cf   : > { %904 = vst [vmem:[%s1830_s8 + $0xd0] sm:$0xff] %v872_v18 }
 0x1d0   : > { %v1188_v58 = vpop.eup %1187  ;;  %905 = vst [vmem:[%s1830_s8 + $0xd8] sm:$0xff] %v873_v24  ;;  %v874_v42 = vadd.f32 %v1803_v63, %v835_v31 }
 0x1d1   : > { %v798_v36 = vmul.f32 %v1188_v58, %v1703_v26 }
 0x1d2   : > { %906 = vst [vmem:[%s1830_s8 + $0xe0] sm:$0xff] %v874_v42 }
 0x1d3   : > { %v836_v60 = vmul.f32 %v1790_v47, %v798_v36 }
 0x1d4   : > { %v1190_v49 = vpop.eup %1189 }
 0x1d5   : > { %v875_v35 = vadd.f32 %v1803_v63, %v836_v60  ;;  %v799_v17 = vmul.f32 %v1190_v49, %v1710_v19  ;;  %v1192_v11 = vpop.eup %1191 }
 0x1d6   : > { %v800_v26 = vmul.f32 %v1192_v11, %v1713_v28 }
 0x1d7   : > { %907 = vst [vmem:[%s1830_s8 + $0xe8] sm:$0xff] %v875_v35  ;;  %v837_v2 = vmul.f32 %v1790_v47, %v799_v17 }
 0x1d8   : > { %v838_v14 = vmul.f32 %v1790_v47, %v800_v26 }
 0x1d9   : > { %v876_v25 = vadd.f32 %v1803_v63, %v837_v2 }
 0x1da   : > { %v877_v19 = vadd.f32 %v1803_v63, %v838_v14 }
 0x1db   : > { %908 = vst [vmem:[%s1830_s8 + $0xf0] sm:$0xff] %v876_v25 }
 0x1dc   : > { %909 = vst [vmem:[%s1830_s8 + $0xf8] sm:$0xff] %v877_v19 }
 0x1dd   : > { %1236 = shalt.err (!%p1233_p2)
}
 0x1de   : > { %s1237_s9 = scalar_lea.hbm %s2197_s26, 4096  ;;  %s1241_s23 = scalar_lea.hbm %s2249_s3, 8192 }
 0x1df   : > { %p1238_p4 = scmp.ne.s32.totalorder %s2197_s26, %s1237_s9  ;;  %p1242_p9 = scmp.lt.u32.totalorder %s2197_s26, %s2249_s3 }
 0x1e0   : > { %p1243_p1 = scmp.lt.u32.totalorder %s1241_s23, %s1237_s9  ;;  %p1245_p6 = scmp.lt.u32.totalorder %s1237_s9, %s2197_s26 }
 0x1e1   : > { %p1239_p5 = pnand %p1238_p4, %p2256_p11 }
 0x1e2   : > { %p1244_p3 = por %p1243_p1, %p1242_p9 }
 0x1e3   : > { %p1240_p7 = pneg %p1239_p5 }
 0x1e4   : > { %p1246_p12 = por %p1245_p6, %p1244_p3 }
 0x1e6   : > { %p1247_p13 = pnand %p1246_p12, %p1240_p7 }
 0x1e8   : > { %1250 = shalt.err (!%p1247_p13)
}
 0x1e9   : > { %s1295_s7 = smov 128   ;;  %s1296_s8 = smov 8  }
 0x1ea   : > { %1017 = dma.vmem_to_hbm [thread:$0]  (%p2256_p11), %s2199_s19, 4096, %s2197_s26, %s911_s16, %s1295_s7, %s1295_s7, %s1296_s8  }
 0x1eb PF: > { %s939_s17 = sand.u32 1, %s1277_s12   ;;  %p2257_p8 = scmp.ne.s32.totalorder %s2254_s25, 0 }
 0x1ec   : > { %p2258_p10 = scmp.ge.s32.totalorder %s1289_s15, 2  ;;  %s940_s20 = scalar_lea.sflag [#allocation4], %s939_s17 }
 0x1ee   : > { %p1024_p0 = pnand %p2258_p10, %p2257_p8 }
 0x1f0   : > { %1272 = dma.done.wait (!%p1024_p0), %s940_s20, 4096  }
 0x1f1   : > { %1274 = vsyncadd (!%p1024_p0), %s940_s20, 4294963200  ;;  %p16_p2 = scmp.ge.s32.totalorder %s1342_s18, 4   ;;  %s2259_s12 = smov %s1281_s13 }
 0x1f2   : > { %s2260_s13 = smov %s1285_s14  ;;  %s2261_s14 = smov %s1354_s21 }
 0x1f3   : > { %s2262_s15 = smov %s1342_s18  ;;  %18 = sbr.rel (!%p16_p2) target bundleno = 5 (0x5), region = 77 }
 0x1fa   :  { %945 = vsyncpa [#allocation3], 1 }
 0x1fb   :  { %947 = vsyncpa [#allocation3 + $0x1], 1 }
 0x1fc   :  { %948 = vsyncpa [#allocation4], 1 }
 0x1fd   :  { %950 = vsyncpa [#allocation4 + $0x1], 1 }

</bundles_post_ra>
